<compile_context>
chip_gen: v5e
topology: v5e:2x2
jax: 0.10.0
libtpu: 0.0.40
codegen_flags: <defaults>
</compile_context>

<pallas_src>
import jax
import jax.numpy as jnp
from jax.experimental import pallas as pl
from jax.experimental.pallas import tpu as pltpu


# ----------------------------- fused kernel ---------------------------------

def _fused_net_kernel(x_ref, w1_ref, b1_ref, w2_ref, b2_ref, o_ref, h_ref):
    """Fused Conv2d(3,8,k=3) -> Conv2d(8,16,k=4), valid padding, stride 1,
    for one batch element.

    x_ref : (1, H, W*Cin)            image, (rows, cols*channels) layout
    w1_ref: (KH1, W*Cin, OW1*C1)     banded conv1 weights (one slab per ky)
    b1_ref: (1, OW1*C1)              conv1 bias tiled over output columns
    w2_ref: (KH2, OW1*C1, OW2*C2)    banded conv2 weights
    b2_ref: (1, OW2*C2)              conv2 bias tiled over output columns
    o_ref : (1, OH2, OW2*C2)         fused output, lane-dense last dim
    h_ref : VMEM scratch (OH1, OW1*C1) conv1 intermediate (never hits HBM)
    """
    KH1 = w1_ref.shape[0]
    KH2 = w2_ref.shape[0]
    OH1 = h_ref.shape[0]
    OH2 = o_ref.shape[1]

    # ---- conv1: one matmul per kernel row (K = W*Cin = 48, N = 112) ----
    acc1 = jnp.zeros(h_ref.shape, jnp.float32)
    for ky in range(KH1):                              # static unroll (3)
        acc1 = acc1 + jnp.dot(x_ref[0, ky:ky + OH1, :], w1_ref[ky],
                              preferred_element_type=jnp.float32)
    h_ref[...] = acc1 + b1_ref[...]                    # bias broadcast over rows

    # ---- conv2: one matmul per kernel row (K = 112, N = 176, lane dense) ----
    acc2 = jnp.zeros(o_ref.shape[1:], jnp.float32)
    for ky in range(KH2):                              # static unroll (4)
        acc2 = acc2 + jnp.dot(h_ref[ky:ky + OH2, :], w2_ref[ky],
                              preferred_element_type=jnp.float32)
    o_ref[0] = (acc2 + b2_ref[...]).astype(o_ref.dtype)


def _fused_net_pallas(xf, w1b, b1f, w2b, b2f):
    """xf: (N, H, W*Cin); returns (N, OH2, OW2*C2)."""
    N, H, WC = xf.shape
    KH1, _, OWC1 = w1b.shape
    KH2, _, OWC2 = w2b.shape
    OH1 = H - KH1 + 1
    OH2 = OH1 - KH2 + 1

    return pl.pallas_call(
        _fused_net_kernel,
        out_shape=jax.ShapeDtypeStruct((N, OH2, OWC2), xf.dtype),
        grid=(N,),
        in_specs=[
            pl.BlockSpec((1, H, WC), lambda n: (n, 0, 0)),
            pl.BlockSpec((KH1, WC, OWC1), lambda n: (0, 0, 0)),
            pl.BlockSpec((1, OWC1), lambda n: (0, 0)),
            pl.BlockSpec((KH2, OWC1, OWC2), lambda n: (0, 0, 0)),
            pl.BlockSpec((1, OWC2), lambda n: (0, 0)),
        ],
        out_specs=pl.BlockSpec((1, OH2, OWC2), lambda n: (n, 0, 0)),
        scratch_shapes=[pltpu.VMEM((OH1, OWC1), jnp.float32)],
        compiler_params=pltpu.CompilerParams(
            dimension_semantics=("parallel",)),        # v7x: 1 image per TC
    )(xf, w1b, b1f, w2b, b2f)


# --------------------------- wrapper / weight prep ---------------------------

def _band_weights(w_hwio, out_w):
    """Build banded (Toeplitz) weights (KH, in_w*Cin, out_w*Cout) so that a
    stride-1 valid conv over one row-band is a single matmul:
        Wb[ky, (j+kx)*Cin + c, j*Cout + co] = w_hwio[ky, kx, c, co]."""
    KH, KW, Cin, Cout = w_hwio.shape
    in_w = out_w + KW - 1
    a = jnp.arange(in_w)[None, :, None]
    j = jnp.arange(out_w)[None, None, :]
    kx = jnp.arange(KW)[:, None, None]
    shift = (a == j + kx).astype(w_hwio.dtype)                 # (KW, in_w, out_w)
    wb = jnp.einsum('kaj,hkcd->hacjd', shift, w_hwio)          # (KH,in_w,Cin,out_w,Cout)
    return wb.reshape(KH, in_w * Cin, out_w * Cout)


def net_forward(x_nchw, params):
    """Forward pass matching the PyTorch module (NCHW in, NCHW out)."""
    (w1, b1), (w2, b2) = params                                # OIHW weights
    N, Cin, H, W = x_nchw.shape
    KH1, KH2 = w1.shape[2], w2.shape[2]
    C1, C2 = w1.shape[0], w2.shape[0]
    OH1, OW1 = H - KH1 + 1, W - KH1 + 1
    OH2, OW2 = OH1 - KH2 + 1, OW1 - KH2 + 1

    # NCHW -> (N, H, W*Cin)  (rows, cols*channels)
    xf = jnp.transpose(x_nchw, (0, 2, 3, 1)).reshape(N, H, W * Cin)

    # OIHW -> HWIO -> banded weights / tiled biases (done once, outside kernel)
    w1b = _band_weights(jnp.transpose(w1, (2, 3, 1, 0)), OW1)  # (3, 48, 112)
    w2b = _band_weights(jnp.transpose(w2, (2, 3, 1, 0)), OW2)  # (4, 112, 176)
    b1f = jnp.tile(b1, OW1).reshape(1, OW1 * C1)
    b2f = jnp.tile(b2, OW2).reshape(1, OW2 * C2)

    outf = _fused_net_pallas(xf, w1b, b1f, w2b, b2f)           # (N, 11, 176)
    out = outf.reshape(N, OH2, OW2, C2)
    return jnp.transpose(out, (0, 3, 1, 2))                    # back to NCHW


# ------------------------------- reference -----------------------------------

def _reference_forward(x_nchw, params):
    (w1, b1), (w2, b2) = params
    y = jax.lax.conv_general_dilated(
        x_nchw, w1, (1, 1), "VALID",
        dimension_numbers=("NCHW", "OIHW", "NCHW")) + b1[None, :, None, None]
    y = jax.lax.conv_general_dilated(
        y, w2, (1, 1), "VALID",
        dimension_numbers=("NCHW", "OIHW", "NCHW")) + b2[None, :, None, None]
    return y


def init_conv_params(key, cin, cout, k):
    """PyTorch Conv2d default init (uniform +-1/sqrt(fan_in))."""
    wk, bk = jax.random.split(key)
    fan_in = cin * k * k
    bound = 1.0 / (fan_in ** 0.5)
    w_oihw = jax.random.uniform(wk, (cout, cin, k, k), jnp.float32, -bound, bound)
    b = jax.random.uniform(bk, (cout,), jnp.float32, -bound, bound)
    return w_oihw, b


if __name__ == "__main__":
    key = jax.random.PRNGKey(0)
    kx, k1, k2 = jax.random.split(key, 3)

    # small input consistent with Conv2d(3, ...): batch=2, C=3, H=W=16
    x = jax.random.normal(kx, (2, 3, 16, 16), jnp.float32)
    params = (init_conv_params(k1, 3, 8, 3),      # Conv2d(3, 8, k=3)
              init_conv_params(k2, 8, 16, 4))     # Conv2d(8, 16, k=4)

    out = jax.jit(net_forward)(x, params)
    out = jax.block_until_ready(out)
    assert out.shape == (2, 16, 11, 11), out.shape

    ref = jax.block_until_ready(_reference_forward(x, params))
    assert jnp.allclose(out, ref, atol=1e-4, rtol=1e-4), "mismatch vs XLA conv reference"

    print("KERNEL_OK")
</pallas_src>

<mosaic_0001>
module attributes {stable_mosaic.version = 11 : i64} {
  func.func @_fused_net_kernel(%arg0: i32, %arg1: memref<1x16x48xf32, #tpu.memory_space<vmem>>, %arg2: memref<3x48x112xf32, #tpu.memory_space<vmem>>, %arg3: memref<1x112xf32, #tpu.memory_space<vmem>>, %arg4: memref<4x112x176xf32, #tpu.memory_space<vmem>>, %arg5: memref<1x176xf32, #tpu.memory_space<vmem>>, %arg6: memref<1x11x176xf32, #tpu.memory_space<vmem>>, %arg7: memref<14x112xf32, #tpu.memory_space<vmem>>) attributes {dimension_semantics = [#tpu.dimension_semantics<parallel>], iteration_bounds = array<i64: 2>, scalar_prefetch = 0 : i64, scratch_operands = 1 : i64, tpu.core_type = #tpu.core_type<tc>, window_params = [{transform_indices = @transform_0, window_bounds = array<i64: 1, 16, 48>}, {pipeline_mode = #tpu.pipeline_mode<synchronous>, transform_indices = @transform_1, window_bounds = array<i64: 3, 48, 112>}, {pipeline_mode = #tpu.pipeline_mode<synchronous>, transform_indices = @transform_2, window_bounds = array<i64: 1, 112>}, {pipeline_mode = #tpu.pipeline_mode<synchronous>, transform_indices = @transform_3, window_bounds = array<i64: 4, 112, 176>}, {pipeline_mode = #tpu.pipeline_mode<synchronous>, transform_indices = @transform_4, window_bounds = array<i64: 1, 176>}, {transform_indices = @transform_5, window_bounds = array<i64: 1, 11, 176>}]} {
    %cst = arith.constant 0.000000e+00 : f32
    %0 = vector.broadcast %cst : f32 to vector<14x112xf32>
    %c0 = arith.constant 0 : index
    %c0_0 = arith.constant 0 : index
    %c0_1 = arith.constant 0 : index
    %1 = vector.load %arg1[%c0, %c0_0, %c0_1] : memref<1x16x48xf32, #tpu.memory_space<vmem>>, vector<1x14x48xf32>
    %2 = vector.shape_cast %1 : vector<1x14x48xf32> to vector<14x48xf32>
    %c0_2 = arith.constant 0 : index
    %c0_3 = arith.constant 0 : index
    %c0_4 = arith.constant 0 : index
    %3 = vector.load %arg2[%c0_2, %c0_3, %c0_4] : memref<3x48x112xf32, #tpu.memory_space<vmem>>, vector<1x48x112xf32>
    %4 = vector.shape_cast %3 : vector<1x48x112xf32> to vector<48x112xf32>
    %cst_5 = arith.constant dense<0.000000e+00> : vector<14x112xf32>
    %5 = tpu.matmul %2, %4, %cst_5 {dimension_numbers = #tpu.dot_dimension_numbers<[1], [0], [0], [1], [0, 0, 1, 1], [], []>} : vector<14x48xf32>, vector<48x112xf32>, vector<14x112xf32> -> vector<14x112xf32>
    %6 = arith.addf %0, %5 : vector<14x112xf32>
    %c0_6 = arith.constant 0 : index
    %c1 = arith.constant 1 : index
    %c0_7 = arith.constant 0 : index
    %7 = vector.load %arg1[%c0_6, %c1, %c0_7] : memref<1x16x48xf32, #tpu.memory_space<vmem>>, vector<1x14x48xf32>
    %8 = vector.shape_cast %7 : vector<1x14x48xf32> to vector<14x48xf32>
    %c1_8 = arith.constant 1 : index
    %c0_9 = arith.constant 0 : index
    %c0_10 = arith.constant 0 : index
    %9 = vector.load %arg2[%c1_8, %c0_9, %c0_10] : memref<3x48x112xf32, #tpu.memory_space<vmem>>, vector<1x48x112xf32>
    %10 = vector.shape_cast %9 : vector<1x48x112xf32> to vector<48x112xf32>
    %cst_11 = arith.constant dense<0.000000e+00> : vector<14x112xf32>
    %11 = tpu.matmul %8, %10, %cst_11 {dimension_numbers = #tpu.dot_dimension_numbers<[1], [0], [0], [1], [0, 0, 1, 1], [], []>} : vector<14x48xf32>, vector<48x112xf32>, vector<14x112xf32> -> vector<14x112xf32>
    %12 = arith.addf %6, %11 : vector<14x112xf32>
    %c0_12 = arith.constant 0 : index
    %c2 = arith.constant 2 : index
    %c0_13 = arith.constant 0 : index
    %13 = vector.load %arg1[%c0_12, %c2, %c0_13] : memref<1x16x48xf32, #tpu.memory_space<vmem>>, vector<1x14x48xf32>
    %14 = vector.shape_cast %13 : vector<1x14x48xf32> to vector<14x48xf32>
    %c2_14 = arith.constant 2 : index
    %c0_15 = arith.constant 0 : index
    %c0_16 = arith.constant 0 : index
    %15 = vector.load %arg2[%c2_14, %c0_15, %c0_16] : memref<3x48x112xf32, #tpu.memory_space<vmem>>, vector<1x48x112xf32>
    %16 = vector.shape_cast %15 : vector<1x48x112xf32> to vector<48x112xf32>
    %cst_17 = arith.constant dense<0.000000e+00> : vector<14x112xf32>
    %17 = tpu.matmul %14, %16, %cst_17 {dimension_numbers = #tpu.dot_dimension_numbers<[1], [0], [0], [1], [0, 0, 1, 1], [], []>} : vector<14x48xf32>, vector<48x112xf32>, vector<14x112xf32> -> vector<14x112xf32>
    %18 = arith.addf %12, %17 : vector<14x112xf32>
    %c0_18 = arith.constant 0 : index
    %c0_19 = arith.constant 0 : index
    %19 = vector.load %arg3[%c0_18, %c0_19] : memref<1x112xf32, #tpu.memory_space<vmem>>, vector<1x112xf32>
    %20 = vector.broadcast %19 : vector<1x112xf32> to vector<14x112xf32>
    %21 = arith.addf %18, %20 : vector<14x112xf32>
    %c0_20 = arith.constant 0 : index
    %c0_21 = arith.constant 0 : index
    %22 = vector.load %arg7[%c0_20, %c0_21] : memref<14x112xf32, #tpu.memory_space<vmem>>, vector<14x112xf32>
    tpu.vector_store %arg7[%c0_20, %c0_21], %21 {strides = array<i32>} : memref<14x112xf32, #tpu.memory_space<vmem>>, vector<14x112xf32>,
    %cst_22 = arith.constant 0.000000e+00 : f32
    %23 = vector.broadcast %cst_22 : f32 to vector<11x176xf32>
    %c0_23 = arith.constant 0 : index
    %c0_24 = arith.constant 0 : index
    %24 = vector.load %arg7[%c0_23, %c0_24] : memref<14x112xf32, #tpu.memory_space<vmem>>, vector<11x112xf32>
    %c0_25 = arith.constant 0 : index
    %c0_26 = arith.constant 0 : index
    %c0_27 = arith.constant 0 : index
    %25 = vector.load %arg4[%c0_25, %c0_26, %c0_27] : memref<4x112x176xf32, #tpu.memory_space<vmem>>, vector<1x112x176xf32>
    %26 = vector.shape_cast %25 : vector<1x112x176xf32> to vector<112x176xf32>
    %cst_28 = arith.constant dense<0.000000e+00> : vector<11x176xf32>
    %27 = tpu.matmul %24, %26, %cst_28 {dimension_numbers = #tpu.dot_dimension_numbers<[1], [0], [0], [1], [0, 0, 1, 1], [], []>} : vector<11x112xf32>, vector<112x176xf32>, vector<11x176xf32> -> vector<11x176xf32>
    %28 = arith.addf %23, %27 : vector<11x176xf32>
    %c1_29 = arith.constant 1 : index
    %c0_30 = arith.constant 0 : index
    %29 = vector.load %arg7[%c1_29, %c0_30] : memref<14x112xf32, #tpu.memory_space<vmem>>, vector<11x112xf32>
    %c1_31 = arith.constant 1 : index
    %c0_32 = arith.constant 0 : index
    %c0_33 = arith.constant 0 : index
    %30 = vector.load %arg4[%c1_31, %c0_32, %c0_33] : memref<4x112x176xf32, #tpu.memory_space<vmem>>, vector<1x112x176xf32>
    %31 = vector.shape_cast %30 : vector<1x112x176xf32> to vector<112x176xf32>
    %cst_34 = arith.constant dense<0.000000e+00> : vector<11x176xf32>
    %32 = tpu.matmul %29, %31, %cst_34 {dimension_numbers = #tpu.dot_dimension_numbers<[1], [0], [0], [1], [0, 0, 1, 1], [], []>} : vector<11x112xf32>, vector<112x176xf32>, vector<11x176xf32> -> vector<11x176xf32>
    %33 = arith.addf %28, %32 : vector<11x176xf32>
    %c2_35 = arith.constant 2 : index
    %c0_36 = arith.constant 0 : index
    %34 = vector.load %arg7[%c2_35, %c0_36] : memref<14x112xf32, #tpu.memory_space<vmem>>, vector<11x112xf32>
    %c2_37 = arith.constant 2 : index
    %c0_38 = arith.constant 0 : index
    %c0_39 = arith.constant 0 : index
    %35 = vector.load %arg4[%c2_37, %c0_38, %c0_39] : memref<4x112x176xf32, #tpu.memory_space<vmem>>, vector<1x112x176xf32>
    %36 = vector.shape_cast %35 : vector<1x112x176xf32> to vector<112x176xf32>
    %cst_40 = arith.constant dense<0.000000e+00> : vector<11x176xf32>
    %37 = tpu.matmul %34, %36, %cst_40 {dimension_numbers = #tpu.dot_dimension_numbers<[1], [0], [0], [1], [0, 0, 1, 1], [], []>} : vector<11x112xf32>, vector<112x176xf32>, vector<11x176xf32> -> vector<11x176xf32>
    %38 = arith.addf %33, %37 : vector<11x176xf32>
    %c3 = arith.constant 3 : index
    %c0_41 = arith.constant 0 : index
    %39 = vector.load %arg7[%c3, %c0_41] : memref<14x112xf32, #tpu.memory_space<vmem>>, vector<11x112xf32>
    %c3_42 = arith.constant 3 : index
    %c0_43 = arith.constant 0 : index
    %c0_44 = arith.constant 0 : index
    %40 = vector.load %arg4[%c3_42, %c0_43, %c0_44] : memref<4x112x176xf32, #tpu.memory_space<vmem>>, vector<1x112x176xf32>
    %41 = vector.shape_cast %40 : vector<1x112x176xf32> to vector<112x176xf32>
    %cst_45 = arith.constant dense<0.000000e+00> : vector<11x176xf32>
    %42 = tpu.matmul %39, %41, %cst_45 {dimension_numbers = #tpu.dot_dimension_numbers<[1], [0], [0], [1], [0, 0, 1, 1], [], []>} : vector<11x112xf32>, vector<112x176xf32>, vector<11x176xf32> -> vector<11x176xf32>
    %43 = arith.addf %38, %42 : vector<11x176xf32>
    %c0_46 = arith.constant 0 : index
    %c0_47 = arith.constant 0 : index
    %44 = vector.load %arg5[%c0_46, %c0_47] : memref<1x176xf32, #tpu.memory_space<vmem>>, vector<1x176xf32>
    %45 = vector.broadcast %44 : vector<1x176xf32> to vector<11x176xf32>
    %46 = arith.addf %43, %45 : vector<11x176xf32>
    %c0_48 = arith.constant 0 : index
    %c0_49 = arith.constant 0 : index
    %c0_50 = arith.constant 0 : index
    %47 = vector.load %arg6[%c0_48, %c0_49, %c0_50] : memref<1x11x176xf32, #tpu.memory_space<vmem>>, vector<1x11x176xf32>
    %48 = vector.shape_cast %47 : vector<1x11x176xf32> to vector<11x176xf32>
    %49 = vector.shape_cast %46 : vector<11x176xf32> to vector<1x11x176xf32>
    tpu.vector_store %arg6[%c0_48, %c0_49, %c0_50], %49 {strides = array<i32>} : memref<1x11x176xf32, #tpu.memory_space<vmem>>, vector<1x11x176xf32>,
    return
  }
  func.func @transform_0(%arg0: i32) -> (i32, i32, i32) {
    %c0_i32 = arith.constant 0 : i32
    %c0_i32_0 = arith.constant 0 : i32
    %c0_i32_1 = arith.constant 0 : i32
    return %arg0, %c0_i32, %c0_i32_0 : i32, i32, i32
  }
  func.func @transform_1(%arg0: i32) -> (i32, i32, i32) {
    %c0_i32 = arith.constant 0 : i32
    %c0_i32_0 = arith.constant 0 : i32
    %c0_i32_1 = arith.constant 0 : i32
    %c0_i32_2 = arith.constant 0 : i32
    return %c0_i32, %c0_i32_0, %c0_i32_1 : i32, i32, i32
  }
  func.func @transform_2(%arg0: i32) -> (i32, i32) {
    %c0_i32 = arith.constant 0 : i32
    %c0_i32_0 = arith.constant 0 : i32
    %c0_i32_1 = arith.constant 0 : i32
    return %c0_i32, %c0_i32_0 : i32, i32
  }
  func.func @transform_3(%arg0: i32) -> (i32, i32, i32) {
    %c0_i32 = arith.constant 0 : i32
    %c0_i32_0 = arith.constant 0 : i32
    %c0_i32_1 = arith.constant 0 : i32
    %c0_i32_2 = arith.constant 0 : i32
    return %c0_i32, %c0_i32_0, %c0_i32_1 : i32, i32, i32
  }
  func.func @transform_4(%arg0: i32) -> (i32, i32) {
    %c0_i32 = arith.constant 0 : i32
    %c0_i32_0 = arith.constant 0 : i32
    %c0_i32_1 = arith.constant 0 : i32
    return %c0_i32, %c0_i32_0 : i32, i32
  }
  func.func @transform_5(%arg0: i32) -> (i32, i32, i32) {
    %c0_i32 = arith.constant 0 : i32
    %c0_i32_0 = arith.constant 0 : i32
    %c0_i32_1 = arith.constant 0 : i32
    return %arg0, %c0_i32, %c0_i32_0 : i32, i32, i32
  }
}

</mosaic_0001>

<bundles_post_ra>
// kernel: tile.18
= control target key start
LH: loop header
LB: loop body
LE: loop exit
PB: predicated region body
PF: predicated region fallthrough
CT: control target
= control target key end

     0   :  { %s28_s0 = inlined_call_operand.vmem [shape: f32[16], index: 0, kind: input, shape index: {}]   ;;  %s29_s1 = inlined_call_operand.vmem [shape: f32[11,16], index: 1, kind: output, shape index: {}]  }
   0x1   :  { %v4_v0 = vld [vmem:[%s28_s0] ss:$0 sm:$0xff] }
   0x2   :  { %5 = vst [vmem:[%s29_s1] sm:$0xff] %v4_v0 }
   0x3   :  { %8 = vst [vmem:[%s29_s1 + $0x8] sm:$0xff] %v4_v0 }

// kernel: tile.19
= control target key start
LH: loop header
LB: loop body
LE: loop exit
PB: predicated region body
PF: predicated region fallthrough
CT: control target
= control target key end

     0   :  { %s77_s10 = smov 112   ;;  %s78_s11 = smov 80   ;;  %vm4_vm0 = vcmask 130048   ;;  %vm10_vm1 = vcmask 1048448   ;;  %vm16_vm2 = vcmask 917248   ;;  %vm22_vm3 = vcmask 786048   ;;  %s124_s0 = inlined_call_operand.vmem [shape: f32[11,16], index: 0, kind: input, shape index: {}]   ;;  %s125_s1 = inlined_call_operand.vmem [shape: f32[1,176], index: 1, kind: output, shape index: {}]  }
   0x1   :  { %v62_v0 = vld [vmem:[%s124_s0 + $0x7] sm:$0x1]   ;;  %v64_v1 = vld [vmem:[%s124_s0 + $0x5] sm:$0x1]   ;;  %v66_v2 = vld [vmem:[%s124_s0 + $0x3] sm:$0x1]  }
   0x2   :  { %8 = vrot.lane.b32.xlu0 %v62_v0, %s77_s10  ;;  %20 = vrot.lane.b32.xlu1 %v64_v1, %s78_s11  ;;  %s79_s14 = smov 48   ;;  %v63_v3 = vld [vmem:[%s124_s0 + $0x6] sm:$0x1]   ;;  %v65_v4 = vld [vmem:[%s124_s0 + $0x4] sm:$0x1]   ;;  %s37_s19 = smov 3 }
   0x3   :  { %32 = vrot.lane.b32.xlu2 %v66_v2, %s79_s14  ;;  %s80_s20 = smov 96   ;;  %s81_s21 = smov 64   ;;  %v67_v5 = vld [vmem:[%s124_s0 + $0x2] ss:$8 sm:%s37_s19]   ;;  %vm28_vm4 = vcmask 654848   ;;  %vm34_vm5 = vcmask 523648  }
   0x4   :  { %s44_s24 = smov 3  ;;  %s82_s25 = smov 32   ;;  %vm41_vm6 = vcmask 392448   ;;  %vm48_vm7 = vcmask 261248  }
   0x5   :  { %v68_v6 = vld [vmem:[%s124_s0 + $0x1] ss:$8 sm:%s44_s24]   ;;  %s83_s28 = smov 16   ;;  %s2_s29 = smov 3 }
   0x6   :  { %v3_v7 = vld [vmem:[%s124_s0] ss:$8 sm:%s2_s29]  }
   0x7   :  { %5 = vst.msk [vmem:[#allocation0] ss:$8 sm:$0x3] %vm4_vm0, %v3_v7  }
   0xa   :  { %14 = vrot.lane.b32.xlu0 %v63_v3, %s80_s20  ;;  %26 = vrot.lane.b32.xlu1 %v65_v4, %s81_s21 }
   0xb   :  { %39 = vrot.lane.b32.xlu2 %v67_v5, %s82_s25 }
  0x12   :  { %46 = vrot.lane.b32.xlu0 %v68_v6, %s83_s28 }
  0x5d   :  { %v33_v8 = vpop.permute.xlu2 %32  }
  0x65   :  { %v40_v9 = vpop.permute.xlu2 %39  }
  0x74   :  { %v9_v10 = vpop.permute.xlu0 %8   ;;  %v21_v11 = vpop.permute.xlu1 %20  }
  0x75   :  { %11 = vst.msk [vmem:[#allocation0] sm:$0x1] %vm10_vm1, %v9_v10  }
  0x7c   :  { %v15_v12 = vpop.permute.xlu0 %14   ;;  %v27_v13 = vpop.permute.xlu1 %26  }
  0x7d   :  { %17 = vst.msk [vmem:[#allocation0] sm:$0x1] %vm16_vm2, %v15_v12  }
  0x7e   :  { %23 = vst.msk [vmem:[#allocation0] sm:$0x1] %vm22_vm3, %v21_v11  }
  0x7f   :  { %29 = vst.msk [vmem:[#allocation0] sm:$0x1] %vm28_vm4, %v27_v13  }
  0x80   :  { %35 = vst.msk [vmem:[#allocation0] sm:$0x1] %vm34_vm5, %v33_v8  }
  0x81   :  { %42 = vst.msk [vmem:[#allocation0] ss:$8 sm:$0x3] %vm41_vm6, %v40_v9  }
  0x84   :  { %v47_v14 = vpop.permute.xlu0 %46  }
  0x85   :  { %49 = vst.msk [vmem:[#allocation0] ss:$8 sm:$0x3] %vm48_vm7, %v47_v14  }
  0x8c   :  { %v52_v15 = vld [vmem:[#allocation0] sm:$0x1]  ;;  %v57_v16 = vld [vmem:[#allocation0 + $0x8] sm:$0x1] }
  0x8d   :  { %55 = vst [vmem:[%s125_s1] sm:$0x1] %v52_v15 }
  0x8e   :  { %69 = vst [vmem:[%s125_s1 + $0x1] sm:$0x1] %v57_v16 }

// kernel: tile.13
= control target key start
LH: loop header
LB: loop body
LE: loop exit
PB: predicated region body
PF: predicated region fallthrough
CT: control target
= control target key end

     0   :  { %s28_s0 = inlined_call_operand.vmem [shape: f32[8], index: 0, kind: input, shape index: {}]   ;;  %s29_s1 = inlined_call_operand.vmem [shape: f32[14,8], index: 1, kind: output, shape index: {}]  }
   0x1   :  { %v4_v0 = vld [vmem:[%s28_s0] ss:$0 sm:$0xff] }
   0x2   :  { %5 = vst [vmem:[%s29_s1] sm:$0xff] %v4_v0 }
   0x3   :  { %8 = vst [vmem:[%s29_s1 + $0x8] sm:$0xff] %v4_v0 }

// kernel: tile.14
= control target key start
LH: loop header
LB: loop body
LE: loop exit
PB: predicated region body
PF: predicated region fallthrough
CT: control target
= control target key end

     0   :  { %s115_s10 = smov 104   ;;  %s116_s11 = smov 88   ;;  %vm3_vm0 = vcmask 64512   ;;  %vm9_vm1 = vcmask 917312   ;;  %vm15_vm2 = vcmask 851712   ;;  %vm21_vm3 = vcmask 786112   ;;  %s183_s0 = inlined_call_operand.vmem [shape: f32[14,8], index: 0, kind: input, shape index: {}]   ;;  %s184_s1 = inlined_call_operand.vmem [shape: f32[1,112], index: 1, kind: output, shape index: {}]  }
   0x1   :  { %v89_v0 = vld [vmem:[%s183_s0 + $0xd] sm:$0x1]   ;;  %v91_v1 = vld [vmem:[%s183_s0 + $0xb] sm:$0x1]   ;;  %v93_v2 = vld [vmem:[%s183_s0 + $0x9] sm:$0x1]  }
   0x2   :  { %7 = vrot.lane.b32.xlu0 %v89_v0, %s115_s10  ;;  %19 = vrot.lane.b32.xlu1 %v91_v1, %s116_s11  ;;  %s117_s14 = smov 72   ;;  %v90_v3 = vld [vmem:[%s183_s0 + $0xc] sm:$0x1]   ;;  %v92_v4 = vld [vmem:[%s183_s0 + $0xa] sm:$0x1]   ;;  %s118_s19 = smov 96  }
   0x3   :  { %31 = vrot.lane.b32.xlu2 %v93_v2, %s117_s14  ;;  %s119_s20 = smov 80   ;;  %v94_v5 = vld [vmem:[%s183_s0 + $0x8] sm:$0x1]   ;;  %s120_s23 = smov 64   ;;  %v95_v6 = vld [vmem:[%s183_s0 + $0x7] sm:$0x1]  }
   0x4   :  { %v96_v7 = vld [vmem:[%s183_s0 + $0x6] sm:$0x1]   ;;  %s121_s28 = smov 56   ;;  %s122_s29 = smov 48   ;;  %v97_v8 = vld [vmem:[%s183_s0 + $0x5] sm:$0x1]  }
   0x5   :  { %s123_s3 = smov 40   ;;  %v98_v9 = vld [vmem:[%s183_s0 + $0x4] sm:$0x1]   ;;  %v99_v10 = vld [vmem:[%s183_s0 + $0x3] sm:$0x1]   ;;  %s124_s8 = smov 32  }
   0x6   :  { %s125_s9 = smov 24   ;;  %v100_v11 = vld [vmem:[%s183_s0 + $0x2] sm:$0x1]   ;;  %s126_s12 = smov 16   ;;  %v101_v12 = vld [vmem:[%s183_s0 + $0x1] sm:$0x1]  }
   0x7   :  { %s127_s15 = smov 8   ;;  %v2_v13 = vld [vmem:[%s183_s0] sm:$0x1]   ;;  %vm27_vm4 = vcmask 720512   ;;  %vm33_vm5 = vcmask 654912   ;;  %vm39_vm6 = vcmask 589312  }
   0x8   :  { %4 = vst.msk [vmem:[#allocation0] sm:$0x1] %vm3_vm0, %v2_v13   ;;  %vm45_vm7 = vcmask 523712   ;;  %vm51_vm8 = vcmask 458112   ;;  %vm57_vm9 = vcmask 392512   ;;  %vm63_vm10 = vcmask 326912  }
   0x9   :  { %vm69_vm11 = vcmask 261312   ;;  %vm75_vm12 = vcmask 195712   ;;  %vm81_vm13 = vcmask 130112  }
   0xa   :  { %13 = vrot.lane.b32.xlu0 %v90_v3, %s118_s19  ;;  %25 = vrot.lane.b32.xlu1 %v92_v4, %s119_s20 }
   0xb   :  { %37 = vrot.lane.b32.xlu2 %v94_v5, %s120_s23 }
  0x12   :  { %43 = vrot.lane.b32.xlu0 %v95_v6, %s121_s28  ;;  %49 = vrot.lane.b32.xlu1 %v96_v7, %s122_s29 }
  0x13   :  { %55 = vrot.lane.b32.xlu2 %v97_v8, %s123_s3 }
  0x1a   :  { %61 = vrot.lane.b32.xlu0 %v98_v9, %s124_s8  ;;  %67 = vrot.lane.b32.xlu1 %v99_v10, %s125_s9 }
  0x1b   :  { %73 = vrot.lane.b32.xlu2 %v100_v11, %s126_s12 }
  0x22   :  { %79 = vrot.lane.b32.xlu0 %v101_v12, %s127_s15 }
  0x5d   :  { %v32_v14 = vpop.permute.xlu2 %31  }
  0x65   :  { %v38_v15 = vpop.permute.xlu2 %37  }
  0x6d   :  { %v56_v16 = vpop.permute.xlu2 %55  }
  0x74   :  { %v8_v17 = vpop.permute.xlu0 %7   ;;  %v20_v18 = vpop.permute.xlu1 %19  }
  0x75   :  { %10 = vst.msk [vmem:[#allocation0] sm:$0x1] %vm9_vm1, %v8_v17   ;;  %v74_v19 = vpop.permute.xlu2 %73  }
  0x7c   :  { %v14_v20 = vpop.permute.xlu0 %13   ;;  %v26_v21 = vpop.permute.xlu1 %25  }
  0x7d   :  { %16 = vst.msk [vmem:[#allocation0] sm:$0x1] %vm15_vm2, %v14_v20  }
  0x7e   :  { %22 = vst.msk [vmem:[#allocation0] sm:$0x1] %vm21_vm3, %v20_v18  }
  0x7f   :  { %28 = vst.msk [vmem:[#allocation0] sm:$0x1] %vm27_vm4, %v26_v21  }
  0x80   :  { %34 = vst.msk [vmem:[#allocation0] sm:$0x1] %vm33_vm5, %v32_v14  }
  0x81   :  { %40 = vst.msk [vmem:[#allocation0] sm:$0x1] %vm39_vm6, %v38_v15  }
  0x84   :  { %v44_v22 = vpop.permute.xlu0 %43   ;;  %v50_v23 = vpop.permute.xlu1 %49  }
  0x85   :  { %46 = vst.msk [vmem:[#allocation0] sm:$0x1] %vm45_vm7, %v44_v22  }
  0x86   :  { %52 = vst.msk [vmem:[#allocation0] sm:$0x1] %vm51_vm8, %v50_v23  }
  0x87   :  { %58 = vst.msk [vmem:[#allocation0] sm:$0x1] %vm57_vm9, %v56_v16  }
  0x8c   :  { %v62_v24 = vpop.permute.xlu0 %61   ;;  %v68_v25 = vpop.permute.xlu1 %67  }
  0x8d   :  { %64 = vst.msk [vmem:[#allocation0] sm:$0x1] %vm63_vm10, %v62_v24  }
  0x8e   :  { %70 = vst.msk [vmem:[#allocation0] sm:$0x1] %vm69_vm11, %v68_v25  }
  0x8f   :  { %76 = vst.msk [vmem:[#allocation0] sm:$0x1] %vm75_vm12, %v74_v19  }
  0x94   :  { %v80_v26 = vpop.permute.xlu0 %79  }
  0x95   :  { %82 = vst.msk [vmem:[#allocation0] sm:$0x1] %vm81_vm13, %v80_v26  }
  0x9c   :  { %v85_v27 = vld [vmem:[#allocation0] sm:$0x1] }
  0x9d   :  { %88 = vst [vmem:[%s184_s1] sm:$0x1] %v85_v27 }

// kernel: net_forward.1
= control target key start
LH: loop header
LB: loop body
LE: loop exit
PB: predicated region body
PF: predicated region fallthrough
CT: control target
= control target key end

     0   :  { %s938_s18 = smov 0   ;;  %s1387_s0 = inlined_call_operand.vmem [shape: f32[2,16,48], index: 0, kind: input, shape index: {}]   ;;  %s1388_s1 = inlined_call_operand.vmem [shape: f32[3,48,112], index: 1, kind: input, shape index: {}]   ;;  %s1389_s2 = inlined_call_operand.vmem [shape: f32[1,112], index: 2, kind: input, shape index: {}]   ;;  %s1390_s3 = inlined_call_operand.vmem [shape: f32[4,112,176], index: 3, kind: input, shape index: {}]   ;;  %s1391_s4 = inlined_call_operand.vmem [shape: f32[1,176], index: 4, kind: input, shape index: {}]   ;;  %s1392_s5 = inlined_call_operand.vmem [shape: f32[2,11,176], index: 5, kind: output, shape index: {}]  }
   0x1 LB: > { %s760_s19 = sadd.s32 4294967295, %s906_s18   ;;  %p764_p0 = scmp.ge.s32.totalorder %s906_s18, 1  ;;  %s906_s18 = sphi %s938_s18, %s15_s18  }
   0x2   : > { %p187_p1 = scmp.lt.s32.totalorder %s906_s18, 3 }
   0x4   : > { %p188_p2 = pnand %p764_p0, %p187_p1 }
   0x5   : > { %p215_p3 = scmp.lt.s32.totalorder (!%p188_p2), %s760_s19, 1 }
   0x6   : > { %191 = sbr.rel (%p188_p2) target bundleno = 338 (0x152), region = 40 }
   0xb   : > { %v784_v0 = vld [vmem:[%s1388_s1 + $0x88] sm:$0xff]  ;;  %v783_v1 = vld [vmem:[%s1388_s1 + $0x80] sm:$0xff]  ;;  %v774_v2 = vld [vmem:[%s1388_s1 + $0x58] sm:$0xff]  ;;  %s1394_s19 = smov (!%p215_p3, %s760_s19), 1  ;;  %vm242_vm0 = vcmask 392192   ;;  %vm347_vm1 = vcmask 916480  }
   0xc   : > { %326 = vmatpush.msra.mxu2 %v784_v0  ;;  %259 = vmatpush.msra.mxu0 %v774_v2  ;;  %v232_v3 = vld [vmem:[%s1388_s1 + $0x28] sm:$0xff]  ;;  %v773_v4 = vld [vmem:[%s1388_s1 + $0x50] sm:$0xff]  ;;  %v782_v5 = vld [vmem:[%s1388_s1 + $0x78] sm:$0xff]  ;;  %s889_s17 = sshll.u32 %s1394_s19, 4  ;;  %vm349_vm2 = vcmask 914432   ;;  %s890_s11 = sshll.u32 %s1394_s19, 5 }
   0xd   : > { %288 = vmatpush.msra.mxu1 %v232_v3  ;;  %v231_v6 = vld [vmem:[%s1388_s1 + $0x20] sm:$0xff]  ;;  %v772_v7 = vld [vmem:[%s1388_s1 + $0x48] sm:$0xff]  ;;  %v230_v8 = vld [vmem:[%s1388_s1 + $0x18] sm:$0xff]  ;;  %s991_s26 = scalar_lea.vmem %s1387_s0, %s889_s17  ;;  %s224_s14 = scalar_lea.vmem %s1392_s5, %s890_s11  ;;  %vm703_vm3 = vcmask 387072  }
   0xe   : > { %327 = vmatpush.msra.mxu2 %v783_v1  ;;  %260 = vmatpush.msra.mxu0 %v773_v4  ;;  %v781_v9 = vld [vmem:[%s1388_s1 + $0x70] sm:$0xff]  ;;  %v771_v10 = vld [vmem:[%s1388_s1 + $0x40] sm:$0xff]  ;;  %v780_v12 = vld [vmem:[%s1388_s1 + $0x68] sm:$0xff] }
   0xf   : > { %289 = vmatpush.msra.mxu1 %v231_v6  ;;  %v229_v11 = vld [vmem:[%s1388_s1 + $0x10] sm:$0xff]  ;;  %v770_v13 = vld [vmem:[%s1388_s1 + $0x38] sm:$0xff]  ;;  %v228_v14 = vld [vmem:[%s1388_s1 + $0x8] sm:$0xff] }
  0x10   : > { %328 = vmatpush.msra.mxu2 %v782_v5  ;;  %261 = vmatpush.msra.mxu0 %v772_v7  ;;  %v779_v15 = vld [vmem:[%s1388_s1 + $0x60] sm:$0xff]  ;;  %v769_v16 = vld [vmem:[%s1388_s1 + $0x30] sm:$0xff]  ;;  %v380_v22 = vld [vmem:[%s1390_s3 + $0xd8] sm:$0xff] }
  0x11   : > { %290 = vmatpush.msra.mxu1 %v230_v8  ;;  %v301_v17 = vld [vmem:[%s991_s26 + $0x2] sm:$0xff]  ;;  %v379_v21 = vld [vmem:[%s1390_s3 + $0xd0] sm:$0xff]  ;;  %v814_v24 = vld [vmem:[%s1390_s3 + $0x1b8] sm:$0xff] }
  0x12   : > { %329 = vmatpush.msra.mxu2 %v781_v9  ;;  %262 = vmatpush.msra.mxu0 %v771_v10  ;;  %v227_v18 = vld [vmem:[%s1388_s1] sm:$0xff]  ;;  %v813_v23 = vld [vmem:[%s1390_s3 + $0x1b0] sm:$0xff]  ;;  %v378_v26 = vld [vmem:[%s1390_s3 + $0xc8] sm:$0xff] }
  0x13   : > { %291 = vmatpush.msra.mxu1 %v229_v11  ;;  %v233_v19 = vld [vmem:[%s991_s26 + $0x1] sm:$0xff]  ;;  %v375_v29 = vld [vmem:[%s1390_s3 + $0xb0] sm:$0xff]  ;;  %v376_v30 = vld [vmem:[%s1390_s3 + $0xb8] sm:$0xff]  ;;  %420 = vmatpush.msra.mxu3 %v813_v23 }
  0x14   : > { %330 = vmatpush.msra.mxu2 %v780_v12  ;;  %263 = vmatpush.msra.mxu0 %v770_v13  ;;  %v225_v20 = vld [vmem:[%s991_s26] sm:$0xff]  ;;  %v812_v28 = vld [vmem:[%s1390_s3 + $0x1a8] sm:$0xff]  ;;  %v809_v31 = vld [vmem:[%s1390_s3 + $0x190] sm:$0xff] }
  0x15   : > { %292 = vmatpush.msra.mxu1 %v228_v14  ;;  %v377_v25 = vld [vmem:[%s1390_s3 + $0xc0] sm:$0xff]  ;;  %v810_v32 = vld [vmem:[%s1390_s3 + $0x198] sm:$0xff]  ;;  %v302_v33 = vld [vmem:[%s991_s26 + $0xa] sm:$0x3f] }
  0x16   : > { %331 = vmatpush.msra.mxu2 %v779_v15  ;;  %264 = vmatpush.msra.mxu0 %v769_v16  ;;  %v811_v27 = vld [vmem:[%s1390_s3 + $0x1a0] sm:$0xff]  ;;  %v234_v35 = vld [vmem:[%s991_s26 + $0x9] sm:$0x3f]  ;;  %v371_v38 = vld [vmem:[%s1390_s3 + $0x90] sm:$0xff] }
  0x17   : > { %785 = vmatmul.msk.f32.vlgmr.msra.gmra.mxu2 %vm242_vm0, %v301_v17  ;;  %293 = vmatpush.msra.mxu1 %v227_v18  ;;  %v373_v34 = vld [vmem:[%s1390_s3 + $0xa0] sm:$0xff]  ;;  %v226_v36 = vld [vmem:[%s991_s26 + $0x8] sm:$0x3f]  ;;  %v372_v41 = vld [vmem:[%s1390_s3 + $0x98] sm:$0xff] }
  0x18   : > { %775 = vmatmul.msk.f32.vlgmr.msra.gmra.mxu0 %vm242_vm0, %v233_v19  ;;  %777 = vmatmul.msk.f32.vlgmr.msra.gmra.mxu1 %vm242_vm0, %v225_v20  ;;  %v374_v37 = vld [vmem:[%s1390_s3 + $0xa8] sm:$0xff]  ;;  %v807_v39 = vld [vmem:[%s1390_s3 + $0x180] sm:$0xff]  ;;  %v805_v43 = vld [vmem:[%s1390_s3 + $0x170] sm:$0xff] }
  0x19   : > { %472 = vmatpush.msrb.mxu1 %v379_v21  ;;  %495 = vmatpush.msrb.mxu2 %v380_v22  ;;  %v808_v40 = vld [vmem:[%s1390_s3 + $0x188] sm:$0xff]  ;;  %v369_v42 = vld [vmem:[%s1390_s3 + $0x80] sm:$0xff]  ;;  %v806_v44 = vld [vmem:[%s1390_s3 + $0x178] sm:$0xff] }
  0x1a   : > { %443 = vmatpush.msrb.mxu0 %v814_v24  ;;  %421 = vmatpush.msra.mxu3 %v811_v27  ;;  %v370_v45 = vld [vmem:[%s1390_s3 + $0x88] sm:$0xff]  ;;  %v367_v46 = vld [vmem:[%s1390_s3 + $0x70] sm:$0xff]  ;;  %v803_v47 = vld [vmem:[%s1390_s3 + $0x160] sm:$0xff] }
  0x1b   : > { %473 = vmatpush.msrb.mxu1 %v377_v25  ;;  %496 = vmatpush.msrb.mxu2 %v378_v26  ;;  %v804_v48 = vld [vmem:[%s1390_s3 + $0x168] sm:$0xff]  ;;  %v368_v49 = vld [vmem:[%s1390_s3 + $0x78] sm:$0xff]  ;;  %v365_v50 = vld [vmem:[%s1390_s3 + $0x60] sm:$0xff] }
  0x1c   : > { %444 = vmatpush.msrb.mxu0 %v812_v28  ;;  %422 = vmatpush.msra.mxu3 %v809_v31  ;;  %v801_v51 = vld [vmem:[%s1390_s3 + $0x150] sm:$0xff]  ;;  %v802_v52 = vld [vmem:[%s1390_s3 + $0x158] sm:$0xff]  ;;  %v366_v53 = vld [vmem:[%s1390_s3 + $0x68] sm:$0xff] }
  0x1d   : > { %474 = vmatpush.msrb.mxu1 %v375_v29  ;;  %497 = vmatpush.msrb.mxu2 %v376_v30  ;;  %v363_v54 = vld [vmem:[%s1390_s3 + $0x50] sm:$0xff]  ;;  %v799_v55 = vld [vmem:[%s1390_s3 + $0x140] sm:$0xff]  ;;  %v800_v56 = vld [vmem:[%s1390_s3 + $0x148] sm:$0xff] }
  0x1e   : > { %445 = vmatpush.msrb.mxu0 %v810_v32  ;;  %423 = vmatpush.msra.mxu3 %v807_v39  ;;  %v364_v57 = vld [vmem:[%s1390_s3 + $0x58] sm:$0xff]  ;;  %v361_v58 = vld [vmem:[%s1390_s3 + $0x40] sm:$0xff]  ;;  %v362_v59 = vld [vmem:[%s1390_s3 + $0x48] sm:$0xff] }
  0x1f   : > { %786 = vmatmul.msk.f32.gmra.mxu2 %vm242_vm0, %v302_v33  ;;  %475 = vmatpush.msrb.mxu1 %v373_v34  ;;  %v359_v60 = vld [vmem:[%s1390_s3 + $0x30] sm:$0xff]  ;;  %v360_v61 = vld [vmem:[%s1390_s3 + $0x38] sm:$0xff]  ;;  %v357_v62 = vld [vmem:[%s1390_s3 + $0x20] sm:$0xff] }
  0x20   : > { %776 = vmatmul.msk.f32.gmra.mxu0 %vm242_vm0, %v234_v35  ;;  %778 = vmatmul.msk.f32.gmra.mxu1 %vm242_vm0, %v226_v36  ;;  %v358_v63 = vld [vmem:[%s1390_s3 + $0x28] sm:$0xff]  ;;  %v797_v0 = vld [vmem:[%s1390_s3 + $0x130] sm:$0xff]  ;;  %v798_v1 = vld [vmem:[%s1390_s3 + $0x138] sm:$0xff] }
  0x21   : > { %498 = vmatpush.msrb.mxu2 %v374_v37  ;;  %476 = vmatpush.msrb.mxu1 %v371_v38  ;;  %v355_v2 = vld [vmem:[%s1390_s3 + $0x10] sm:$0xff]  ;;  %v356_v3 = vld [vmem:[%s1390_s3 + $0x18] sm:$0xff]  ;;  %v795_v4 = vld [vmem:[%s1390_s3 + $0x120] sm:$0xff] }
  0x22   : > { %446 = vmatpush.msrb.mxu0 %v808_v40  ;;  %424 = vmatpush.msra.mxu3 %v805_v43  ;;  %v796_v5 = vld [vmem:[%s1390_s3 + $0x128] sm:$0xff]  ;;  %v353_v6 = vld [vmem:[%s1390_s3] sm:$0xff]  ;;  %v881_v8 = vld [vmem:[%s1390_s3 + $0x370] sm:$0xff] }
  0x23   : > { %499 = vmatpush.msrb.mxu2 %v372_v41  ;;  %477 = vmatpush.msrb.mxu1 %v369_v42  ;;  %v354_v7 = vld [vmem:[%s1390_s3 + $0x8] sm:$0xff]  ;;  %v882_v9 = vld [vmem:[%s1390_s3 + $0x378] sm:$0xff]  ;;  %v793_v10 = vld [vmem:[%s1390_s3 + $0x110] sm:$0xff] }
  0x24   : > { %447 = vmatpush.msrb.mxu0 %v806_v44  ;;  %425 = vmatpush.msra.mxu3 %v803_v47  ;;  %v794_v11 = vld [vmem:[%s1390_s3 + $0x118] sm:$0xff]  ;;  %v879_v12 = vld [vmem:[%s1390_s3 + $0x360] sm:$0xff]  ;;  %v880_v13 = vld [vmem:[%s1390_s3 + $0x368] sm:$0xff] }
  0x25   : > { %500 = vmatpush.msrb.mxu2 %v370_v45  ;;  %478 = vmatpush.msrb.mxu1 %v367_v46  ;;  %v791_v14 = vld [vmem:[%s1390_s3 + $0x100] sm:$0xff]  ;;  %v792_v15 = vld [vmem:[%s1390_s3 + $0x108] sm:$0xff]  ;;  %v877_v16 = vld [vmem:[%s1390_s3 + $0x350] sm:$0xff] }
  0x26   : > { %448 = vmatpush.msrb.mxu0 %v804_v48  ;;  %426 = vmatpush.msra.mxu3 %v801_v51  ;;  %v878_v17 = vld [vmem:[%s1390_s3 + $0x358] sm:$0xff]  ;;  %v789_v18 = vld [vmem:[%s1390_s3 + $0xf0] sm:$0xff]  ;;  %v875_v20 = vld [vmem:[%s1390_s3 + $0x340] sm:$0xff] }
  0x27   : > { %501 = vmatpush.msrb.mxu2 %v368_v49  ;;  %479 = vmatpush.msrb.mxu1 %v365_v50  ;;  %v790_v19 = vld [vmem:[%s1390_s3 + $0xf8] sm:$0xff]  ;;  %v876_v21 = vld [vmem:[%s1390_s3 + $0x348] sm:$0xff]  ;;  %v787_v22 = vld [vmem:[%s1390_s3 + $0xe0] sm:$0xff] }
  0x28   : > { %449 = vmatpush.msrb.mxu0 %v802_v52  ;;  %427 = vmatpush.msra.mxu3 %v799_v55  ;;  %v788_v23 = vld [vmem:[%s1390_s3 + $0xe8] sm:$0xff]  ;;  %v849_v24 = vld [vmem:[%s1390_s3 + $0x290] sm:$0xff]  ;;  %v850_v25 = vld [vmem:[%s1390_s3 + $0x298] sm:$0xff] }
  0x29   : > { %502 = vmatpush.msrb.mxu2 %v366_v53  ;;  %480 = vmatpush.msrb.mxu1 %v363_v54  ;;  %v873_v26 = vld [vmem:[%s1390_s3 + $0x330] sm:$0xff]  ;;  %v874_v27 = vld [vmem:[%s1390_s3 + $0x338] sm:$0xff]  ;;  %v847_v28 = vld [vmem:[%s1390_s3 + $0x280] sm:$0xff] }
  0x2a   : > { %450 = vmatpush.msrb.mxu0 %v800_v56  ;;  %428 = vmatpush.msra.mxu3 %v797_v0  ;;  %v848_v29 = vld [vmem:[%s1390_s3 + $0x288] sm:$0xff]  ;;  %v871_v30 = vld [vmem:[%s1390_s3 + $0x320] sm:$0xff]  ;;  %v845_v32 = vld [vmem:[%s1390_s3 + $0x270] sm:$0xff] }
  0x2b   : > { %503 = vmatpush.msrb.mxu2 %v364_v57  ;;  %481 = vmatpush.msrb.mxu1 %v361_v58  ;;  %v872_v31 = vld [vmem:[%s1390_s3 + $0x328] sm:$0xff]  ;;  %v846_v33 = vld [vmem:[%s1390_s3 + $0x278] sm:$0xff]  ;;  %v869_v34 = vld [vmem:[%s1390_s3 + $0x310] sm:$0xff] }
  0x2c   : > { %451 = vmatpush.msrb.mxu0 %v798_v1  ;;  %429 = vmatpush.msra.mxu3 %v795_v4  ;;  %v870_v35 = vld [vmem:[%s1390_s3 + $0x318] sm:$0xff]  ;;  %v843_v36 = vld [vmem:[%s1390_s3 + $0x260] sm:$0xff]  ;;  %v844_v37 = vld [vmem:[%s1390_s3 + $0x268] sm:$0xff] }
  0x2d   : > { %504 = vmatpush.msrb.mxu2 %v362_v59  ;;  %482 = vmatpush.msrb.mxu1 %v359_v60  ;;  %v867_v38 = vld [vmem:[%s1390_s3 + $0x300] sm:$0xff]  ;;  %v868_v39 = vld [vmem:[%s1390_s3 + $0x308] sm:$0xff]  ;;  %v841_v40 = vld [vmem:[%s1390_s3 + $0x250] sm:$0xff] }
  0x2e   : > { %452 = vmatpush.msrb.mxu0 %v796_v5  ;;  %430 = vmatpush.msra.mxu3 %v793_v10  ;;  %v842_v41 = vld [vmem:[%s1390_s3 + $0x258] sm:$0xff]  ;;  %v865_v42 = vld [vmem:[%s1390_s3 + $0x2f0] sm:$0xff]  ;;  %v839_v44 = vld [vmem:[%s1390_s3 + $0x240] sm:$0xff] }
  0x2f   : > { %505 = vmatpush.msrb.mxu2 %v360_v61  ;;  %483 = vmatpush.msrb.mxu1 %v357_v62  ;;  %v866_v43 = vld [vmem:[%s1390_s3 + $0x2f8] sm:$0xff]  ;;  %v840_v45 = vld [vmem:[%s1390_s3 + $0x248] sm:$0xff]  ;;  %v863_v46 = vld [vmem:[%s1390_s3 + $0x2e0] sm:$0xff] }
  0x30   : > { %453 = vmatpush.msrb.mxu0 %v794_v11  ;;  %431 = vmatpush.msra.mxu3 %v791_v14  ;;  %v864_v47 = vld [vmem:[%s1390_s3 + $0x2e8] sm:$0xff]  ;;  %v837_v48 = vld [vmem:[%s1390_s3 + $0x230] sm:$0xff]  ;;  %v838_v49 = vld [vmem:[%s1390_s3 + $0x238] sm:$0xff] }
  0x31   : > { %506 = vmatpush.msrb.mxu2 %v358_v63  ;;  %484 = vmatpush.msrb.mxu1 %v355_v2  ;;  %v861_v50 = vld [vmem:[%s1390_s3 + $0x2d0] sm:$0xff]  ;;  %v862_v51 = vld [vmem:[%s1390_s3 + $0x2d8] sm:$0xff]  ;;  %v835_v52 = vld [vmem:[%s1390_s3 + $0x220] sm:$0xff] }
  0x32   : > { %454 = vmatpush.msrb.mxu0 %v792_v15  ;;  %432 = vmatpush.msra.mxu3 %v789_v18  ;;  %v836_v53 = vld [vmem:[%s1390_s3 + $0x228] sm:$0xff]  ;;  %v859_v54 = vld [vmem:[%s1390_s3 + $0x2c0] sm:$0xff]  ;;  %v833_v56 = vld [vmem:[%s1390_s3 + $0x210] sm:$0xff] }
  0x33   : > { %507 = vmatpush.msrb.mxu2 %v356_v3  ;;  %485 = vmatpush.msrb.mxu1 %v353_v6  ;;  %v860_v55 = vld [vmem:[%s1390_s3 + $0x2c8] sm:$0xff]  ;;  %v834_v57 = vld [vmem:[%s1390_s3 + $0x218] sm:$0xff]  ;;  %v857_v58 = vld [vmem:[%s1390_s3 + $0x2b0] sm:$0xff] }
  0x34   : > { %455 = vmatpush.msrb.mxu0 %v790_v19  ;;  %433 = vmatpush.msra.mxu3 %v787_v22  ;;  %v858_v59 = vld [vmem:[%s1390_s3 + $0x2b8] sm:$0xff]  ;;  %v831_v60 = vld [vmem:[%s1390_s3 + $0x200] sm:$0xff]  ;;  %v832_v61 = vld [vmem:[%s1390_s3 + $0x208] sm:$0xff] }
  0x35   : > { %508 = vmatpush.msrb.mxu2 %v354_v7  ;;  %642 = vmatpush.msra.mxu1 %v881_v8  ;;  %v855_v0 = vld [vmem:[%s1390_s3 + $0x2a0] sm:$0xff]  ;;  %v856_v1 = vld [vmem:[%s1390_s3 + $0x2a8] sm:$0xff]  ;;  %v829_v3 = vld [vmem:[%s1390_s3 + $0x1f0] sm:$0xff] }
  0x36   : > { %456 = vmatpush.msrb.mxu0 %v788_v23  ;;  %555 = vmatpush.msrb.mxu3 %v849_v24  ;;  %v830_v4 = vld [vmem:[%s1390_s3 + $0x1f8] sm:$0xff]  ;;  %v827_v5 = vld [vmem:[%s1390_s3 + $0x1e0] sm:$0xff]  ;;  %v828_v7 = vld [vmem:[%s1390_s3 + $0x1e8] sm:$0xff] }
  0x37   : > { %665 = vmatpush.msra.mxu2 %v882_v9  ;;  %643 = vmatpush.msra.mxu1 %v879_v12  ;;  %v899_v6 = vld [vmem:[%s1389_s2] ss:$0 sm:$0xff]  ;;  %v825_v9 = vld [vmem:[%s1390_s3 + $0x1d0] sm:$0xff]  ;;  %v826_v10 = vld [vmem:[%s1390_s3 + $0x1d8] sm:$0xff] }
  0x38   : > { %578 = vmatpush.msra.mxu0 %v850_v25  ;;  %556 = vmatpush.msrb.mxu3 %v847_v28  ;;  %v823_v12 = vld [vmem:[%s1390_s3 + $0x1c0] sm:$0xff] }
  0x39   : > { %666 = vmatpush.msra.mxu2 %v880_v13  ;;  %644 = vmatpush.msra.mxu1 %v877_v16  ;;  %v824_v13 = vld [vmem:[%s1390_s3 + $0x1c8] sm:$0xff] }
  0x3a   : > { %579 = vmatpush.msra.mxu0 %v848_v29  ;;  %557 = vmatpush.msrb.mxu3 %v845_v32 }
  0x3b   : > { %667 = vmatpush.msra.mxu2 %v878_v17  ;;  %645 = vmatpush.msra.mxu1 %v875_v20 }
  0x3c   : > { %580 = vmatpush.msra.mxu0 %v846_v33  ;;  %558 = vmatpush.msrb.mxu3 %v843_v36 }
  0x3d   : > { %668 = vmatpush.msra.mxu2 %v876_v21  ;;  %646 = vmatpush.msra.mxu1 %v873_v26 }
  0x3e   : > { %581 = vmatpush.msra.mxu0 %v844_v37  ;;  %559 = vmatpush.msrb.mxu3 %v841_v40  ;;  %v690_v37 = vld [vmem:[%s1391_s4] sm:$0x3] }
  0x3f   : > { %669 = vmatpush.msra.mxu2 %v874_v27  ;;  %647 = vmatpush.msra.mxu1 %v871_v30 }
  0x40   : > { %582 = vmatpush.msra.mxu0 %v842_v41  ;;  %560 = vmatpush.msrb.mxu3 %v839_v44 }
  0x41   : > { %670 = vmatpush.msra.mxu2 %v872_v31  ;;  %648 = vmatpush.msra.mxu1 %v869_v34 }
  0x42   : > { %583 = vmatpush.msra.mxu0 %v840_v45  ;;  %561 = vmatpush.msrb.mxu3 %v837_v48 }
  0x43   : > { %671 = vmatpush.msra.mxu2 %v870_v35  ;;  %649 = vmatpush.msra.mxu1 %v867_v38 }
  0x44   : > { %584 = vmatpush.msra.mxu0 %v838_v49  ;;  %562 = vmatpush.msrb.mxu3 %v835_v52 }
  0x45   : > { %672 = vmatpush.msra.mxu2 %v868_v39  ;;  %650 = vmatpush.msra.mxu1 %v865_v42  ;;  %v693_v42 = vperm.slane %v690_v37, 1 }
  0x46   : > { %585 = vmatpush.msra.mxu0 %v836_v53  ;;  %563 = vmatpush.msrb.mxu3 %v833_v56 }
  0x47   : > { %673 = vmatpush.msra.mxu2 %v866_v43  ;;  %651 = vmatpush.msra.mxu1 %v863_v46 }
  0x48   : > { %586 = vmatpush.msra.mxu0 %v834_v57  ;;  %564 = vmatpush.msrb.mxu3 %v831_v60 }
  0x49   : > { %674 = vmatpush.msra.mxu2 %v864_v47  ;;  %652 = vmatpush.msra.mxu1 %v861_v50  ;;  %v692_v50 = vperm.slane %v690_v37, 0 }
  0x4a   : > { %587 = vmatpush.msra.mxu0 %v832_v61  ;;  %565 = vmatpush.msrb.mxu3 %v829_v3 }
  0x4b   : > { %675 = vmatpush.msra.mxu2 %v862_v51  ;;  %653 = vmatpush.msra.mxu1 %v859_v54 }
  0x4c   : > { %588 = vmatpush.msra.mxu0 %v830_v4  ;;  %566 = vmatpush.msrb.mxu3 %v827_v5 }
  0x4d   : > { %676 = vmatpush.msra.mxu2 %v860_v55  ;;  %654 = vmatpush.msra.mxu1 %v857_v58 }
  0x4e   : > { %589 = vmatpush.msra.mxu0 %v828_v7  ;;  %567 = vmatpush.msrb.mxu3 %v825_v9 }
  0x4f   : > { %677 = vmatpush.msra.mxu2 %v858_v59  ;;  %655 = vmatpush.msra.mxu1 %v855_v0 }
  0x50   : > { %590 = vmatpush.msra.mxu0 %v826_v10  ;;  %568 = vmatpush.msrb.mxu3 %v823_v12 }
  0x51   : > { %678 = vmatpush.msra.mxu2 %v856_v1 }
  0x52   : > { %591 = vmatpush.msra.mxu0 %v824_v13 }
  0x95   : > { %v266_v62 = vpop.f32.mrf.mxu0  ;;  %v295_v63 = vpop.f32.mrf.mxu1 }
  0x96   : > { %v296_v2 = vadd.f32 %v295_v63, %v266_v62 }
  0x9a   : > { %v333_v8 = vpop.f32.mrf.mxu2 }
  0x9b   : > { %v339_v11 = vadd.f32 %v333_v8, %v296_v2 }
  0x9d   : > { %v345_v14 = vadd.f32 %v899_v6, %v339_v11  ;;  %v269_v15 = vpop.f32.mrf.mxu0  ;;  %v298_v16 = vpop.f32.mrf.mxu1 }
  0x9e   : > { %v299_v17 = vadd.f32 %v298_v16, %v269_v15 }
  0x9f   : > { %348 = vst.msk [vmem:[#allocation2] sm:$0xff] %vm347_vm1, %v345_v14 }
  0xa2   : > { %v336_v18 = vpop.f32.mrf.mxu2 }
  0xa3   : > { %v340_v19 = vadd.f32 %v336_v18, %v299_v17 }
  0xa5   : > { %v346_v20 = vadd.f32 %v899_v6, %v340_v19 }
  0xa6   : > { %v351_v21 = vld [vmem:[#allocation2] sm:$0xff] }
  0xa7   : > { %350 = vst.msk [vmem:[#allocation2 + $0x8] sm:$0x3f] %vm349_vm2, %v346_v20  ;;  %819 = vmatmul.msk.f32.vlgmr.msrb.gmra.mxu1 %vm347_vm1, %v351_v21  ;;  %821 = vmatmul.msk.f32.vlgmr.msrb.gmra.mxu2 %vm347_vm1, %v351_v21 }
  0xae   : > { %v381_v22 = vld [vmem:[#allocation2 + $0x1] sm:$0xff]  ;;  %v382_v24 = vld [vmem:[#allocation2 + $0x9] sm:$0x7] }
  0xaf   : > { %v352_v23 = vld [vmem:[#allocation2 + $0x8] sm:$0x7]  ;;  %815 = vmatmul.msk.f32.vlgmr.msra.gmra.mxu3 %vm347_vm1, %v381_v22  ;;  %817 = vmatmul.msk.f32.vlgmr.msrb.gmra.mxu0 %vm347_vm1, %v381_v22  ;;  %v604_v27 = vld [vmem:[#allocation2 + $0xb] sm:$0x7] }
  0xb0   : > { %820 = vmatmul.msk.f32.gmra.mxu1 %vm347_vm1, %v352_v23  ;;  %822 = vmatmul.msk.f32.gmra.mxu2 %vm347_vm1, %v352_v23  ;;  %v603_v25 = vld [vmem:[#allocation2 + $0x3] sm:$0xff] }
  0xb1   : > { %v516_v26 = vld [vmem:[#allocation2 + $0x2] sm:$0xff]  ;;  %v517_v28 = vld [vmem:[#allocation2 + $0xa] sm:$0x7] }
  0xb7   : > { %816 = vmatmul.msk.f32.gmra.mxu3 %vm347_vm1, %v382_v24  ;;  %818 = vmatmul.msk.f32.gmra.mxu0 %vm347_vm1, %v382_v24 }
  0xb8   : > { %883 = vmatmul.msk.f32.vlgmr.msra.gmra.mxu1 %vm347_vm1, %v603_v25  ;;  %885 = vmatmul.msk.f32.vlgmr.msra.gmra.mxu2 %vm347_vm1, %v603_v25 }
  0xbf   : > { %851 = vmatmul.msk.f32.vlgmr.msrb.gmra.mxu3 %vm347_vm1, %v516_v26  ;;  %853 = vmatmul.msk.f32.vlgmr.msra.gmra.mxu0 %vm347_vm1, %v516_v26 }
  0xc0   : > { %884 = vmatmul.msk.f32.gmra.mxu1 %vm347_vm1, %v604_v27  ;;  %886 = vmatmul.msk.f32.gmra.mxu2 %vm347_vm1, %v604_v27 }
  0xc7   : > { %852 = vmatmul.msk.f32.gmra.mxu3 %vm347_vm1, %v517_v28  ;;  %854 = vmatmul.msk.f32.gmra.mxu0 %vm347_vm1, %v517_v28 }
 0x124   : > { %v487_v31 = vpop.f32.mrf.mxu1 }
 0x12a   : > { %v510_v29 = vpop.f32.mrf.mxu2 }
 0x12c   : > { %v458_v30 = vpop.f32.mrf.mxu0 }
 0x12d   : > { %v490_v35 = vpop.f32.mrf.mxu1  ;;  %v511_v38 = vadd.f32 %v510_v29, %v458_v30 }
 0x132   : > { %v435_v32 = vpop.f32.mrf.mxu3 }
 0x133   : > { %v513_v33 = vpop.f32.mrf.mxu2  ;;  %v488_v44 = vadd.f32 %v487_v31, %v435_v32 }
 0x134   : > { %v461_v34 = vpop.f32.mrf.mxu0 }
 0x135   : > { %v657_v46 = vpop.f32.mrf.mxu1  ;;  %v514_v48 = vadd.f32 %v513_v33, %v461_v34 }
 0x13a   : > { %v438_v36 = vpop.f32.mrf.mxu3 }
 0x13b   : > { %v680_v39 = vpop.f32.mrf.mxu2  ;;  %v491_v57 = vadd.f32 %v490_v35, %v438_v36 }
 0x13c   : > { %v593_v40 = vpop.f32.mrf.mxu0 }
 0x13d   : > { %v600_v41 = vadd.f32 %v593_v40, %v511_v38  ;;  %v660_v61 = vpop.f32.mrf.mxu1 }
 0x13f   : > { %v687_v43 = vadd.f32 %v680_v39, %v600_v41 }
 0x141   : > { %v697_v45 = vadd.f32 %v693_v42, %v687_v43 }
 0x142   : > { %v570_v47 = vpop.f32.mrf.mxu3 }
 0x143   : > { %701 = vst.msk [vmem:[%s224_s14 + $0x8] sm:$0xff] %vm242_vm0, %v697_v45  ;;  %v599_v49 = vadd.f32 %v570_v47, %v488_v44  ;;  %v683_v54 = vpop.f32.mrf.mxu2 }
 0x144   : > { %v596_v51 = vpop.f32.mrf.mxu0 }
 0x145   : > { %v686_v52 = vadd.f32 %v657_v46, %v599_v49  ;;  %v602_v53 = vadd.f32 %v596_v51, %v514_v48 }
 0x147   : > { %v696_v55 = vadd.f32 %v692_v50, %v686_v52  ;;  %v689_v56 = vadd.f32 %v683_v54, %v602_v53 }
 0x149   : > { %700 = vst [vmem:[%s224_s14] sm:$0xff] %v696_v55  ;;  %v699_v58 = vadd.f32 %v693_v42, %v689_v56 }
 0x14a   : > { %v573_v59 = vpop.f32.mrf.mxu3 }
 0x14b   : > { %704 = vst.msk [vmem:[%s224_s14 + $0x18] sm:$0x7] %vm703_vm3, %v699_v58  ;;  %v601_v60 = vadd.f32 %v573_v59, %v491_v57 }
 0x14d   : > { %v688_v62 = vadd.f32 %v660_v61, %v601_v60 }
 0x14f   : > { %v698_v63 = vadd.f32 %v692_v50, %v688_v62 }
 0x151   : > { %702 = vst [vmem:[%s224_s14 + $0x10] sm:$0x7] %v698_v63 }
 0x152 PF: > { %s15_s18 = sadd.s32 1, %s906_s18  }
 0x153   : > { %p12_p4 = scmp.ge.s32.totalorder %s15_s18, 4  }
 0x155   :  { %14 = sbr.rel (!%p12_p4) target bundleno = 1 (0x1), region = 75 }

</bundles_post_ra>
